<compile_context>
chip_gen: v7x
topology: tpu7x:2x2x1
jax: 0.10.0
libtpu: 0.0.40
codegen_flags: <defaults>
</compile_context>

<pallas_src>
import jax
import jax.numpy as jnp
from jax.experimental import pallas as pl
from jax.experimental.pallas import tpu as pltpu

_LANE = 128


def gdsa_kernel(seq_ref, adj_ref, w_fc_ref, b_gcn_ref, alpha_ref,
                w_lin_colsum_ref, b_lin_sum_ref, logits_ref, h_ref, acc_ref):
    # seq_ref : (1, col_tile, n_in)      f32, streams along k
    # adj_ref : (1, row_tile, col_tile)  f32 or bf16, streams along (i, k)
    # acc_ref : (row_tile, n_h_pad)      f32 accumulator scratch
    # outputs : logits (1, row_tile), h (1, row_tile, n_h_pad)
    k = pl.program_id(1)

    @pl.when(k == 0)
    def _():
        acc_ref[...] = jnp.zeros_like(acc_ref)

    x = seq_ref[0]                        # (col_tile, n_in)
    a = adj_ref[0]                        # (row_tile, col_tile)

    # GCN: per-column-tile feature transform, then neighborhood aggregation.
    seq_fts = jnp.dot(x, w_fc_ref[...],
                      preferred_element_type=jnp.float32)            # (col_tile, n_h_pad)
    acc_ref[...] += jnp.dot(a, seq_fts.astype(a.dtype),
                            preferred_element_type=jnp.float32)      # (row_tile, n_h_pad)

    @pl.when(k == pl.num_programs(1) - 1)
    def _():
        out = acc_ref[...] + b_gcn_ref[...]                           # (row_tile, n_h_pad)
        alpha = alpha_ref[0, 0]                                       # SMEM scalar
        h = jnp.where(out > 0, out, alpha * out)                      # PReLU
        h_ref[0] = h.astype(h_ref.dtype)

        # Folded scoring head: (h @ W_lin + b_lin).sum(1) == h @ colsum + bsum
        logits2d = jnp.dot(h, w_lin_colsum_ref[...],
                           preferred_element_type=jnp.float32)        # (row_tile, 1)
        logits_ref[0] = (logits2d[:, 0] + b_lin_sum_ref[0, 0]).astype(logits_ref.dtype)


def _pad_to(n, m):
    return max(m, ((n + m - 1) // m) * m)


def _divisor_tile(n_pad, cap):
    """Largest multiple of 128 that divides n_pad and is <= cap."""
    t = min(n_pad, max(_LANE, (cap // _LANE) * _LANE))
    t = (t // _LANE) * _LANE
    while n_pad % t != 0:
        t -= _LANE
    return t


def gdsa_forward(seq, adj, w_fc, b_gcn, alpha, w_lin, b_lin,
                 *, adj_dtype=jnp.float32):
    B, N, n_in = seq.shape
    n_h = w_fc.shape[1]
    assert B == 1, "module squeezes batch dim 0; single-graph batch expected"

    N_pad = _pad_to(N, _LANE)
    n_h_pad = _pad_to(n_h, _LANE)

    # --- wrapper-side padding (lane-dense outputs, 128-aligned streaming) ---
    seq_p = jnp.zeros((1, N_pad, n_in), jnp.float32).at[:, :N, :].set(
        seq.astype(jnp.float32))
    adj_p = jnp.zeros((1, N_pad, N_pad), adj_dtype).at[:, :N, :N].set(
        adj.astype(adj_dtype))
    w_fc_p = jnp.zeros((n_in, n_h_pad), jnp.float32).at[:, :n_h].set(
        w_fc.astype(jnp.float32))
    b_gcn_p = jnp.zeros((1, n_h_pad), jnp.float32).at[:, :n_h].set(
        b_gcn.astype(jnp.float32))

    # Folded scoring head precompute (exact up to float associativity).
    w_lin_colsum = jnp.sum(w_lin.astype(jnp.float32), axis=1, keepdims=True)  # (n_h, 1)
    w_lin_colsum_p = jnp.zeros((n_h_pad, 1), jnp.float32).at[:n_h, :].set(w_lin_colsum)
    b_lin_sum = jnp.sum(b_lin).reshape(1, 1).astype(jnp.float32)              # SMEM scalar
    alpha_s = jnp.reshape(alpha, (1, 1)).astype(jnp.float32)                  # SMEM scalar

    # --- tile sizing: bounded VMEM, >=2 row steps for 2-TC chips when possible ---
    row_cap = 512
    if N_pad >= 256:
        row_cap = min(row_cap, N_pad // 2)
    row_tile = _divisor_tile(N_pad, row_cap)
    col_tile = _divisor_tile(N_pad, 512)
    grid = (N_pad // row_tile, N_pad // col_tile)

    in_specs = [
        pl.BlockSpec((1, col_tile, n_in), lambda i, k: (0, k, 0)),     # seq col tile
        pl.BlockSpec((1, row_tile, col_tile), lambda i, k: (0, i, k)), # adj block
        pl.BlockSpec((n_in, n_h_pad), lambda i, k: (0, 0)),            # W_fc^T (padded)
        pl.BlockSpec((1, n_h_pad), lambda i, k: (0, 0)),               # b_gcn (padded)
        pl.BlockSpec(memory_space=pltpu.MemorySpace.SMEM),             # alpha scalar
        pl.BlockSpec((n_h_pad, 1), lambda i, k: (0, 0)),               # colsum(W_lin)
        pl.BlockSpec(memory_space=pltpu.MemorySpace.SMEM),             # sum(b_lin)
    ]
    out_specs = (
        pl.BlockSpec((1, row_tile), lambda i, k: (0, i)),              # logits row tile
        pl.BlockSpec((1, row_tile, n_h_pad), lambda i, k: (0, i, 0)),  # h row tile
    )

    adj_bytes = N_pad * N_pad * jnp.dtype(adj_dtype).itemsize
    seq_bytes = grid[0] * N_pad * n_in * 4
    h_bytes = N_pad * n_h_pad * 4
    flops = 2 * N_pad * N_pad * n_h_pad + 2 * grid[0] * N_pad * n_in * n_h_pad

    logits_p, h_p = pl.pallas_call(
        gdsa_kernel,
        out_shape=(
            jax.ShapeDtypeStruct((1, N_pad), jnp.float32),
            jax.ShapeDtypeStruct((1, N_pad, n_h_pad), jnp.float32),
        ),
        grid=grid,
        in_specs=in_specs,
        out_specs=out_specs,
        scratch_shapes=[pltpu.VMEM((row_tile, n_h_pad), jnp.float32)],
        compiler_params=pltpu.CompilerParams(
            dimension_semantics=("parallel", "arbitrary"),
            vmem_limit_bytes=48 * 1024 * 1024,
        ),
        cost_estimate=pl.CostEstimate(
            flops=int(flops),
            transcendentals=0,
            bytes_accessed=int(adj_bytes + seq_bytes + h_bytes + N_pad * 4),
        ),
    )(seq_p, adj_p, w_fc_p, b_gcn_p, alpha_s, w_lin_colsum_p, b_lin_sum)

    # Slice padding back off.
    return logits_p[:, :N], h_p[:, :N, :n_h]


def reference_forward(seq, adj, w_fc, b_gcn, alpha, w_lin, b_lin):
    seq_fts = jnp.einsum('bni,ih->bnh', seq, w_fc)
    out = jnp.einsum('bnm,bmh->bnh', adj, seq_fts) + b_gcn[None]
    h = jnp.where(out > 0, out, alpha[0, 0] * out)
    lin_out = h[0] @ w_lin + b_lin[0]
    logits = lin_out.sum(1)[None, :]
    return logits, h


if __name__ == "__main__":
    # Small, TPU-friendly sizes consistent with the module's forward.
    N, n_in, n_h = 8, 32, 32

    key = jax.random.PRNGKey(0)
    k_seq, k_adj, k_wfc, k_wlin, k_blin = jax.random.split(key, 5)

    seq = jax.random.normal(k_seq, (1, N, n_in), dtype=jnp.float32)
    # symmetric row-normalized-ish dense adjacency (sparse=False path)
    adj_raw = jax.random.uniform(k_adj, (N, N), dtype=jnp.float32)
    adj_sym = (adj_raw + adj_raw.T) * 0.5 + jnp.eye(N, dtype=jnp.float32)
    adj = (adj_sym / adj_sym.sum(axis=1, keepdims=True))[None]

    # Deterministic parameter init (shapes mirror nn.Linear / PReLU / GCN bias).
    bound_fc = 1.0 / jnp.sqrt(jnp.float32(n_in))
    w_fc = jax.random.uniform(k_wfc, (n_in, n_h), jnp.float32, -bound_fc, bound_fc)
    b_gcn = jnp.zeros((1, n_h), dtype=jnp.float32)            # GCN bias, fill_(0.0)
    alpha = jnp.full((1, 1), 0.25, dtype=jnp.float32)          # PReLU default slope

    bound_lin = 1.0 / jnp.sqrt(jnp.float32(n_h))
    w_lin = jax.random.uniform(k_wlin, (n_h, n_h), jnp.float32, -bound_lin, bound_lin)
    b_lin = jax.random.uniform(k_blin, (1, n_h), jnp.float32, -bound_lin, bound_lin)

    ref_logits, ref_h = reference_forward(seq, adj, w_fc, b_gcn, alpha, w_lin, b_lin)

    # f32 adjacency path (exact vs. reference).
    logits, h = gdsa_forward(seq, adj, w_fc, b_gcn, alpha, w_lin, b_lin,
                             adj_dtype=jnp.float32)
    jax.block_until_ready((logits, h))
    assert logits.shape == (1, N) and h.shape == (1, N, n_h)
    assert jnp.allclose(logits, ref_logits, atol=1e-4, rtol=1e-4)
    assert jnp.allclose(h, ref_h, atol=1e-4, rtol=1e-4)

    # bf16 adjacency-streaming path (halved HBM traffic; f32 accumulation).
    logits_bf, h_bf = gdsa_forward(seq, adj, w_fc, b_gcn, alpha, w_lin, b_lin,
                                   adj_dtype=jnp.bfloat16)
    jax.block_until_ready((logits_bf, h_bf))
    assert jnp.allclose(logits_bf, ref_logits, atol=5e-2, rtol=2e-2)
    assert jnp.allclose(h_bf, ref_h, atol=5e-2, rtol=2e-2)

    print("KERNEL_OK")
</pallas_src>

<mosaic_0001>
module attributes {stable_mosaic.version = 11 : i64} {
  func.func @gdsa_kernel(%arg0: i32, %arg1: i32, %arg2: memref<1x128x32xf32, #tpu.memory_space<vmem>>, %arg3: memref<1x128x128xf32, #tpu.memory_space<vmem>>, %arg4: memref<32x128xf32, #tpu.memory_space<vmem>>, %arg5: memref<1x128xf32, #tpu.memory_space<vmem>>, %arg6: memref<1x1xf32, #tpu.memory_space<smem>>, %arg7: memref<128x1xf32, #tpu.memory_space<vmem>>, %arg8: memref<1x1xf32, #tpu.memory_space<smem>>, %arg9: memref<1x128xf32, #tpu.memory_space<vmem>>, %arg10: memref<1x128x128xf32, #tpu.memory_space<vmem>>, %arg11: memref<128x128xf32, #tpu.memory_space<vmem>>) attributes {dimension_semantics = [#tpu.dimension_semantics<parallel>, #tpu.dimension_semantics<arbitrary>], iteration_bounds = array<i64: 1, 1>, scalar_prefetch = 0 : i64, scratch_operands = 1 : i64, tpu.core_type = #tpu.core_type<tc>, window_params = [{transform_indices = @transform_0, window_bounds = array<i64: 1, 128, 32>}, {transform_indices = @transform_1, window_bounds = array<i64: 1, 128, 128>}, {pipeline_mode = #tpu.pipeline_mode<synchronous>, transform_indices = @transform_2, window_bounds = array<i64: 32, 128>}, {pipeline_mode = #tpu.pipeline_mode<synchronous>, transform_indices = @transform_3, window_bounds = array<i64: 1, 128>}, {transform_indices = @transform_4, window_bounds = array<i64: 1, 1>}, {pipeline_mode = #tpu.pipeline_mode<synchronous>, transform_indices = @transform_5, window_bounds = array<i64: 128, 1>}, {transform_indices = @transform_6, window_bounds = array<i64: 1, 1>}, {transform_indices = @transform_7, window_bounds = array<i64: 1, 128>}, {transform_indices = @transform_8, window_bounds = array<i64: 1, 128, 128>}]} {
    %c0_i32 = arith.constant 0 : i32
    %0 = arith.cmpi eq, %arg1, %c0_i32 : i32
    %1 = arith.extui %0 : i1 to i32
    %c0_i32_0 = arith.constant 0 : i32
    %2 = arith.cmpi ne, %1, %c0_i32_0 : i32
    scf.if %2 {
      %cst_15 = arith.constant 0.000000e+00 : f32
      %16 = vector.broadcast %cst_15 : f32 to vector<128x128xf32>
      %c0_16 = arith.constant 0 : index
      %c0_17 = arith.constant 0 : index
      %17 = vector.load %arg11[%c0_16, %c0_17] : memref<128x128xf32, #tpu.memory_space<vmem>>, vector<128x128xf32>
      tpu.vector_store %arg11[%c0_16, %c0_17], %16 {strides = array<i32>} : memref<128x128xf32, #tpu.memory_space<vmem>>, vector<128x128xf32>,
    } else {
    }
    %c0 = arith.constant 0 : index
    %c0_1 = arith.constant 0 : index
    %c0_2 = arith.constant 0 : index
    %3 = vector.load %arg2[%c0, %c0_1, %c0_2] : memref<1x128x32xf32, #tpu.memory_space<vmem>>, vector<1x128x32xf32>
    %4 = vector.shape_cast %3 : vector<1x128x32xf32> to vector<128x32xf32>
    %c0_3 = arith.constant 0 : index
    %c0_4 = arith.constant 0 : index
    %c0_5 = arith.constant 0 : index
    %5 = vector.load %arg3[%c0_3, %c0_4, %c0_5] : memref<1x128x128xf32, #tpu.memory_space<vmem>>, vector<1x128x128xf32>
    %6 = vector.shape_cast %5 : vector<1x128x128xf32> to vector<128x128xf32>
    %c0_6 = arith.constant 0 : index
    %c0_7 = arith.constant 0 : index
    %7 = vector.load %arg4[%c0_6, %c0_7] : memref<32x128xf32, #tpu.memory_space<vmem>>, vector<32x128xf32>
    %cst = arith.constant dense<0.000000e+00> : vector<128x128xf32>
    %8 = tpu.matmul %4, %7, %cst {dimension_numbers = #tpu.dot_dimension_numbers<[1], [0], [0], [1], [0, 0, 1, 1], [], []>} : vector<128x32xf32>, vector<32x128xf32>, vector<128x128xf32> -> vector<128x128xf32>
    %c0_8 = arith.constant 0 : index
    %c0_9 = arith.constant 0 : index
    %9 = vector.load %arg11[%c0_8, %c0_9] : memref<128x128xf32, #tpu.memory_space<vmem>>, vector<128x128xf32>
    %cst_10 = arith.constant dense<0.000000e+00> : vector<128x128xf32>
    %10 = tpu.matmul %6, %8, %cst_10 {dimension_numbers = #tpu.dot_dimension_numbers<[1], [0], [0], [1], [0, 0, 1, 1], [], []>} : vector<128x128xf32>, vector<128x128xf32>, vector<128x128xf32> -> vector<128x128xf32>
    %11 = arith.addf %9, %10 : vector<128x128xf32>
    %c0_11 = arith.constant 0 : index
    %c0_12 = arith.constant 0 : index
    %12 = vector.load %arg11[%c0_11, %c0_12] : memref<128x128xf32, #tpu.memory_space<vmem>>, vector<128x128xf32>
    tpu.vector_store %arg11[%c0_11, %c0_12], %11 {strides = array<i32>} : memref<128x128xf32, #tpu.memory_space<vmem>>, vector<128x128xf32>,
    %c0_i32_13 = arith.constant 0 : i32
    %13 = arith.cmpi eq, %arg1, %c0_i32_13 : i32
    %14 = arith.extui %13 : i1 to i32
    %c0_i32_14 = arith.constant 0 : i32
    %15 = arith.cmpi ne, %14, %c0_i32_14 : i32
    scf.if %15 {
      %c0_15 = arith.constant 0 : index
      %c0_16 = arith.constant 0 : index
      %16 = vector.load %arg11[%c0_15, %c0_16] : memref<128x128xf32, #tpu.memory_space<vmem>>, vector<128x128xf32>
      %c0_17 = arith.constant 0 : index
      %c0_18 = arith.constant 0 : index
      %17 = vector.load %arg5[%c0_17, %c0_18] : memref<1x128xf32, #tpu.memory_space<vmem>>, vector<1x128xf32>
      %18 = vector.broadcast %17 : vector<1x128xf32> to vector<128x128xf32>
      %19 = arith.addf %16, %18 : vector<128x128xf32>
      %c0_19 = arith.constant 0 : index
      %c0_20 = arith.constant 0 : index
      %20 = memref.load %arg6[%c0_19, %c0_20] : memref<1x1xf32, #tpu.memory_space<smem>>
      %cst_21 = arith.constant 0.000000e+00 : f32
      %21 = vector.broadcast %cst_21 : f32 to vector<128x128xf32>
      %22 = arith.cmpf ogt, %19, %21 : vector<128x128xf32>
      %23 = vector.broadcast %20 : f32 to vector<128x128xf32>
      %24 = arith.mulf %23, %19 : vector<128x128xf32>
      %25 = arith.select %22, %19, %24 : vector<128x128xi1>, vector<128x128xf32>
      %c0_22 = arith.constant 0 : index
      %c0_23 = arith.constant 0 : index
      %c0_24 = arith.constant 0 : index
      %26 = vector.load %arg10[%c0_22, %c0_23, %c0_24] : memref<1x128x128xf32, #tpu.memory_space<vmem>>, vector<1x128x128xf32>
      %27 = vector.shape_cast %26 : vector<1x128x128xf32> to vector<128x128xf32>
      %28 = vector.shape_cast %25 : vector<128x128xf32> to vector<1x128x128xf32>
      tpu.vector_store %arg10[%c0_22, %c0_23, %c0_24], %28 {strides = array<i32>} : memref<1x128x128xf32, #tpu.memory_space<vmem>>, vector<1x128x128xf32>,
      %c0_25 = arith.constant 0 : index
      %c0_26 = arith.constant 0 : index
      %29 = vector.load %arg7[%c0_25, %c0_26] : memref<128x1xf32, #tpu.memory_space<vmem>>, vector<128x1xf32>
      %cst_27 = arith.constant dense<0.000000e+00> : vector<128x1xf32>
      %30 = tpu.matmul %25, %29, %cst_27 {dimension_numbers = #tpu.dot_dimension_numbers<[1], [0], [0], [1], [0, 0, 1, 1], [], []>} : vector<128x128xf32>, vector<128x1xf32>, vector<128x1xf32> -> vector<128x1xf32>
      %31 = vector.shape_cast %30 : vector<128x1xf32> to vector<128xf32>
      %c0_28 = arith.constant 0 : index
      %c0_29 = arith.constant 0 : index
      %32 = memref.load %arg8[%c0_28, %c0_29] : memref<1x1xf32, #tpu.memory_space<smem>>
      %33 = vector.broadcast %32 : f32 to vector<128xf32>
      %34 = arith.addf %31, %33 : vector<128xf32>
      %c0_30 = arith.constant 0 : index
      %c0_31 = arith.constant 0 : index
      %35 = vector.load %arg9[%c0_30, %c0_31] : memref<1x128xf32, #tpu.memory_space<vmem>>, vector<1x128xf32>
      %36 = vector.shape_cast %35 : vector<1x128xf32> to vector<128xf32>
      %37 = vector.shape_cast %34 : vector<128xf32> to vector<1x128xf32>
      tpu.vector_store %arg9[%c0_30, %c0_31], %37 {strides = array<i32>} : memref<1x128xf32, #tpu.memory_space<vmem>>, vector<1x128xf32>,
    } else {
    }
    return
  }
  func.func @transform_0(%arg0: i32, %arg1: i32) -> (i32, i32, i32) {
    %c0_i32 = arith.constant 0 : i32
    %c0_i32_0 = arith.constant 0 : i32
    %c0_i32_1 = arith.constant 0 : i32
    return %c0_i32, %arg1, %c0_i32_0 : i32, i32, i32
  }
  func.func @transform_1(%arg0: i32, %arg1: i32) -> (i32, i32, i32) {
    %c0_i32 = arith.constant 0 : i32
    %c0_i32_0 = arith.constant 0 : i32
    return %c0_i32, %arg0, %arg1 : i32, i32, i32
  }
  func.func @transform_2(%arg0: i32, %arg1: i32) -> (i32, i32) {
    %c0_i32 = arith.constant 0 : i32
    %c0_i32_0 = arith.constant 0 : i32
    %c0_i32_1 = arith.constant 0 : i32
    return %c0_i32, %c0_i32_0 : i32, i32
  }
  func.func @transform_3(%arg0: i32, %arg1: i32) -> (i32, i32) {
    %c0_i32 = arith.constant 0 : i32
    %c0_i32_0 = arith.constant 0 : i32
    %c0_i32_1 = arith.constant 0 : i32
    return %c0_i32, %c0_i32_0 : i32, i32
  }
  func.func @transform_4(%arg0: i32, %arg1: i32) -> (i32, i32) {
    %c0_i32 = arith.constant 0 : i32
    %c0_i32_0 = arith.constant 0 : i32
    %c0_i32_1 = arith.constant 0 : i32
    return %c0_i32, %c0_i32_0 : i32, i32
  }
  func.func @transform_5(%arg0: i32, %arg1: i32) -> (i32, i32) {
    %c0_i32 = arith.constant 0 : i32
    %c0_i32_0 = arith.constant 0 : i32
    %c0_i32_1 = arith.constant 0 : i32
    return %c0_i32, %c0_i32_0 : i32, i32
  }
  func.func @transform_6(%arg0: i32, %arg1: i32) -> (i32, i32) {
    %c0_i32 = arith.constant 0 : i32
    %c0_i32_0 = arith.constant 0 : i32
    %c0_i32_1 = arith.constant 0 : i32
    return %c0_i32, %c0_i32_0 : i32, i32
  }
  func.func @transform_7(%arg0: i32, %arg1: i32) -> (i32, i32) {
    %c0_i32 = arith.constant 0 : i32
    %c0_i32_0 = arith.constant 0 : i32
    return %c0_i32, %arg0 : i32, i32
  }
  func.func @transform_8(%arg0: i32, %arg1: i32) -> (i32, i32, i32) {
    %c0_i32 = arith.constant 0 : i32
    %c0_i32_0 = arith.constant 0 : i32
    %c0_i32_1 = arith.constant 0 : i32
    return %c0_i32, %arg0, %c0_i32_0 : i32, i32, i32
  }
}

</mosaic_0001>

<bundles_post_ra>
// kernel: tpu_custom_call.1
= control target key start
LH: loop header
LB: loop body
LE: loop exit
PB: predicated region body
PF: predicated region fallthrough
CT: control target
= control target key end

     0   :  { %16 = vsyncpa [#allocation6], 0  ;;  %vm88_vm0 = vcmask 261120   ;;  %s1726_s0 = inlined_call_operand.vmem [shape: f32[1,128,32], index: 0, kind: input, shape index: {}]   ;;  %s1727_s1 = inlined_call_operand.vmem [shape: f32[1,128,128], index: 1, kind: input, shape index: {}]   ;;  %s1728_s2 = inlined_call_operand.vmem [shape: f32[32,128], index: 2, kind: input, shape index: {}]   ;;  %s1729_s3 = inlined_call_operand.vmem [shape: f32[1,128], index: 3, kind: input, shape index: {}]   ;;  %s1730_s4 = inlined_call_operand.<no memory space> [shape: f32[1,1], index: 4, kind: input, shape index: {}]   ;;  %s1731_s5 = inlined_call_operand.vmem [shape: f32[128,1], index: 5, kind: input, shape index: {}]   ;;  %s1732_s6 = inlined_call_operand.<no memory space> [shape: f32[1,1], index: 6, kind: input, shape index: {}]   ;;  %s1733_s7 = inlined_call_operand.hbm [shape: f32[1,128], index: 7, kind: output, shape index: {0}]   ;;  %s1734_s8 = inlined_call_operand.hbm [shape: f32[1,128,128], index: 8, kind: output, shape index: {1}]  }
   0x1   :  { %v84_v0 = vld [vmem:[%s1728_s2] sm:$0xff]  ;;  %v85_v1 = vld [vmem:[%s1728_s2 + $0x8] sm:$0xff]  ;;  %v86_v2 = vld [vmem:[%s1728_s2 + $0x10] sm:$0xff] }
   0x2   :  { %v1214_v3 = vpack.c.bf16 %v85_v1, %v84_v0  ;;  %v87_v4 = vld [vmem:[%s1728_s2 + $0x18] sm:$0xff]  ;;  %v52_v5 = vld [vmem:[%s1726_s0] sm:$0xff] }
   0x3   :  { %v1218_v6 = vpack.c.bf16 %v87_v4, %v86_v2  ;;  %1078 = vmatprep.mubr.msk.f32.mxu0 %vm88_vm0, %v52_v5 }
   0x4   :  { %1215 = vmatprep.subr.bf16.mxu0 %v1214_v3 }
   0x5   :  { %1217 = vmatpush3.bf16.msra.mxu0 %v1214_v3 }
   0x6   :  { %1219 = vmatprep.subr.bf16.mxu0 %v1218_v6 }
   0x7   :  { %17 = vsyncpa [#allocation8], 0  ;;  %v53_v7 = vld [vmem:[%s1726_s0 + $0x8] sm:$0xff]  ;;  %v54_v8 = vld [vmem:[%s1726_s0 + $0x10] sm:$0xff] }
   0x8   :  { %v55_v9 = vld [vmem:[%s1726_s0 + $0x18] sm:$0xff]  ;;  %v56_v10 = vld [vmem:[%s1726_s0 + $0x20] sm:$0xff]  ;;  %v57_v11 = vld [vmem:[%s1726_s0 + $0x28] sm:$0xff] }
   0x9   :  { %1221 = vmatpush3.bf16.msra.mxu0 %v1218_v6  ;;  %v58_v12 = vld [vmem:[%s1726_s0 + $0x30] sm:$0xff]  ;;  %v59_v13 = vld [vmem:[%s1726_s0 + $0x38] sm:$0xff]  ;;  %v60_v14 = vld [vmem:[%s1726_s0 + $0x40] sm:$0xff] }
   0xa   :  { %v61_v15 = vld [vmem:[%s1726_s0 + $0x48] sm:$0xff]  ;;  %v62_v16 = vld [vmem:[%s1726_s0 + $0x50] sm:$0xff]  ;;  %v63_v17 = vld [vmem:[%s1726_s0 + $0x58] sm:$0xff] }
   0xb   :  { %v64_v18 = vld [vmem:[%s1726_s0 + $0x60] sm:$0xff]  ;;  %v65_v19 = vld [vmem:[%s1726_s0 + $0x68] sm:$0xff]  ;;  %v66_v20 = vld [vmem:[%s1726_s0 + $0x70] sm:$0xff] }
   0xc   :  { %1079 = vmatmul.mubr.msk.f32.vlgmr.msra.gmra.mrb[0].mxu0 %vm88_vm0, %v53_v7  ;;  %v67_v21 = vld [vmem:[%s1726_s0 + $0x78] sm:$0xff]  ;;  %v68_v22 = vld [vmem:[%s1727_s1] sm:$0xff]  ;;  %v584_v24 = vld [vmem:[%s1731_s5 + $0x8] sm:$0xff] }
   0xd   :  { %1081 = vmatprep.mubr.msk.f32.mxu0 %vm88_vm0, %v54_v8  ;;  %1134 = vmatprep.mubr.f32.mxu1 %v68_v22  ;;  %v583_v23 = vld [vmem:[%s1731_s5] sm:$0xff]  ;;  %v585_v25 = vld [vmem:[%s1731_s5 + $0x10] sm:$0xff]  ;;  %v586_v27 = vld [vmem:[%s1731_s5 + $0x18] sm:$0xff] }
   0xe   :  { %v1495_v26 = vpack.c.bf16 %v584_v24, %v583_v23  ;;  %v1500_v28 = vpack.c.bf16 %v586_v27, %v585_v25  ;;  %v587_v29 = vld [vmem:[%s1731_s5 + $0x20] sm:$0xff]  ;;  %v588_v30 = vld [vmem:[%s1731_s5 + $0x28] sm:$0xff]  ;;  %v589_v32 = vld [vmem:[%s1731_s5 + $0x30] sm:$0xff]  ;;  %v1629_v24 = vstv %s1730_s4 }
   0xf   :  { %v1511_v31 = vpack.c.bf16 %v588_v30, %v587_v29  ;;  %v590_v33 = vld [vmem:[%s1731_s5 + $0x38] sm:$0xff]  ;;  %v591_v35 = vld [vmem:[%s1731_s5 + $0x40] sm:$0xff]  ;;  %v592_v36 = vld [vmem:[%s1731_s5 + $0x48] sm:$0xff] }
  0x10   :  { %1082 = vmatmul.mubr.msk.f32.gmra.mrb[2].mxu0 %vm88_vm0, %v55_v9  ;;  %1255 = vmatprep.subr.bf16.mxu0 %v1495_v26  ;;  %v1521_v34 = vpack.c.bf16 %v590_v33, %v589_v32  ;;  %v1531_v37 = vpack.c.bf16 %v592_v36, %v591_v35  ;;  %v593_v38 = vld [vmem:[%s1731_s5 + $0x50] sm:$0xff]  ;;  %v594_v39 = vld [vmem:[%s1731_s5 + $0x58] sm:$0xff]  ;;  %v595_v41 = vld [vmem:[%s1731_s5 + $0x60] sm:$0xff] }
  0x11   :  { %1084 = vmatprep.mubr.msk.f32.mxu0 %vm88_vm0, %v56_v10  ;;  %1257 = vmatpush3.bf16.msra.mxu0 %v1495_v26  ;;  %v1541_v40 = vpack.c.bf16 %v594_v39, %v593_v38  ;;  %v596_v42 = vld [vmem:[%s1731_s5 + $0x68] sm:$0xff]  ;;  %v70_v5 = vld [vmem:[%s1727_s1 + $0x10] sm:$0xff]  ;;  %v71_v6 = vld [vmem:[%s1727_s1 + $0x18] sm:$0xff] }
  0x12   :  { %1259 = vmatprep.subr.bf16.mxu0 %v1500_v28  ;;  %v1551_v43 = vpack.c.bf16 %v596_v42, %v595_v41  ;;  %v69_v4 = vld [vmem:[%s1727_s1 + $0x8] sm:$0xff]  ;;  %v72_v7 = vld [vmem:[%s1727_s1 + $0x20] sm:$0xff]  ;;  %v74_v9 = vld [vmem:[%s1727_s1 + $0x30] sm:$0xff] }
  0x13   :  { %v73_v8 = vld [vmem:[%s1727_s1 + $0x28] sm:$0xff]  ;;  %v75_v10 = vld [vmem:[%s1727_s1 + $0x38] sm:$0xff]  ;;  %v1624_v22 = vld [vmem:[%s1729_s3] ss:$0 sm:$0xff] }
  0x14   :  { %1085 = vmatmul.mubr.msk.f32.gmra.mrb[4].mxu0 %vm88_vm0, %v57_v11  ;;  %v76_v11 = vld [vmem:[%s1727_s1 + $0x40] sm:$0xff] }
  0x15   :  { %1087 = vmatprep.mubr.msk.f32.mxu0 %vm88_vm0, %v58_v12  ;;  %1261 = vmatpush3.bf16.msra.mxu0 %v1500_v28  ;;  %v77_v12 = vld [vmem:[%s1727_s1 + $0x48] sm:$0xff] }
  0x16   :  { %1263 = vmatprep.subr.bf16.mxu0 %v1511_v31 }
  0x18   :  { %1088 = vmatmul.mubr.msk.f32.gmra.mrb[6].mxu0 %vm88_vm0, %v59_v13  ;;  %v78_v13 = vld [vmem:[%s1727_s1 + $0x50] sm:$0xff] }
  0x19   :  { %1090 = vmatprep.mubr.msk.f32.mxu0 %vm88_vm0, %v60_v14  ;;  %1265 = vmatpush3.bf16.msra.mxu0 %v1511_v31  ;;  %v79_v14 = vld [vmem:[%s1727_s1 + $0x58] sm:$0xff] }
  0x1a   :  { %1267 = vmatprep.subr.bf16.mxu0 %v1521_v34 }
  0x1c   :  { %1091 = vmatmul.mubr.msk.f32.gmra.mrb[8].mxu0 %vm88_vm0, %v61_v15  ;;  %v80_v15 = vld [vmem:[%s1727_s1 + $0x60] sm:$0xff] }
  0x1d   :  { %1093 = vmatprep.mubr.msk.f32.mxu0 %vm88_vm0, %v62_v16  ;;  %1269 = vmatpush3.bf16.msra.mxu0 %v1521_v34  ;;  %v81_v16 = vld [vmem:[%s1727_s1 + $0x68] sm:$0xff] }
  0x1e   :  { %1271 = vmatprep.subr.bf16.mxu0 %v1531_v37 }
  0x20   :  { %1094 = vmatmul.mubr.msk.f32.gmra.mrb[10].mxu0 %vm88_vm0, %v63_v17  ;;  %v82_v17 = vld [vmem:[%s1727_s1 + $0x70] sm:$0xff] }
  0x21   :  { %1096 = vmatprep.mubr.msk.f32.mxu0 %vm88_vm0, %v64_v18  ;;  %1273 = vmatpush3.bf16.msra.mxu0 %v1531_v37  ;;  %v83_v18 = vld [vmem:[%s1727_s1 + $0x78] sm:$0xff] }
  0x22   :  { %1275 = vmatprep.subr.bf16.mxu0 %v1541_v40 }
  0x24   :  { %1097 = vmatmul.mubr.msk.f32.gmra.mrb[12].mxu0 %vm88_vm0, %v65_v19  ;;  %v597_v19 = vld [vmem:[%s1731_s5 + $0x70] sm:$0xff] }
  0x25   :  { %1099 = vmatprep.mubr.msk.f32.mxu0 %vm88_vm0, %v66_v20  ;;  %1277 = vmatpush3.bf16.msra.mxu0 %v1541_v40  ;;  %v598_v20 = vld [vmem:[%s1731_s5 + $0x78] sm:$0xff]  ;;  %s1358_s5 = smov [#allocation7]  }
  0x26   :  { %1279 = vmatprep.subr.bf16.mxu0 %v1551_v43 }
  0x28   :  { %1100 = vmatmul.mubr.msk.f32.gmra.mrb[14].mxu0 %vm88_vm0, %v67_v21  ;;  %v1282_v21 = vpack.c.bf16 %v598_v20, %v597_v19 }
  0x29   :  { %1281 = vmatpush3.bf16.msra.mxu0 %v1551_v43 }
  0x2a   :  { %1283 = vmatprep.subr.bf16.mxu0 %v1282_v21 }
  0x2d   :  { %1285 = vmatpush3.bf16.msra.mxu0 %v1282_v21 }
  0xdf   :  { %v1080_v44 = vpop.f32.mrb[0].mxu0 }
  0xe0   :  { %v203_v45 = vpop.f32.mrb[1].mxu0 }
  0xe1   :  { %v1222_v46 = vpack.c.bf16 %v1080_v44, %v203_v45 }
  0xe3   :  { %v1083_v47 = vpop.f32.mrb[2].mxu0  ;;  %1223 = vmatprep.subr.bf16.mxu1 %v1222_v46 }
  0xe4   :  { %v213_v48 = vpop.f32.mrb[3].mxu0  ;;  %1225 = vmatpush3.bf16.msra.mxu1 %v1222_v46 }
  0xe5   :  { %v1226_v49 = vpack.c.bf16 %v1083_v47, %v213_v48 }
  0xe7   :  { %v1086_v50 = vpop.f32.mrb[4].mxu0  ;;  %1227 = vmatprep.subr.bf16.mxu1 %v1226_v49 }
  0xe8   :  { %v223_v51 = vpop.f32.mrb[5].mxu0  ;;  %1229 = vmatpush3.bf16.msra.mxu1 %v1226_v49 }
  0xe9   :  { %v1230_v52 = vpack.c.bf16 %v1086_v50, %v223_v51 }
  0xeb   :  { %v1089_v53 = vpop.f32.mrb[6].mxu0  ;;  %1231 = vmatprep.subr.bf16.mxu1 %v1230_v52 }
  0xec   :  { %v233_v54 = vpop.f32.mrb[7].mxu0  ;;  %1233 = vmatpush3.bf16.msra.mxu1 %v1230_v52 }
  0xed   :  { %v1234_v55 = vpack.c.bf16 %v1089_v53, %v233_v54 }
  0xef   :  { %v1092_v56 = vpop.f32.mrb[8].mxu0  ;;  %1235 = vmatprep.subr.bf16.mxu1 %v1234_v55 }
  0xf0   :  { %v243_v57 = vpop.f32.mrb[9].mxu0  ;;  %1237 = vmatpush3.bf16.msra.mxu1 %v1234_v55 }
  0xf1   :  { %v1238_v58 = vpack.c.bf16 %v1092_v56, %v243_v57 }
  0xf3   :  { %v1095_v59 = vpop.f32.mrb[10].mxu0  ;;  %1239 = vmatprep.subr.bf16.mxu1 %v1238_v58 }
  0xf4   :  { %v253_v60 = vpop.f32.mrb[11].mxu0  ;;  %1241 = vmatpush3.bf16.msra.mxu1 %v1238_v58 }
  0xf5   :  { %v1242_v61 = vpack.c.bf16 %v1095_v59, %v253_v60 }
  0xf7   :  { %v1098_v62 = vpop.f32.mrb[12].mxu0  ;;  %1243 = vmatprep.subr.bf16.mxu1 %v1242_v61 }
  0xf8   :  { %v263_v63 = vpop.f32.mrb[13].mxu0  ;;  %1245 = vmatpush3.bf16.msra.mxu1 %v1242_v61 }
  0xf9   :  { %v1246_v0 = vpack.c.bf16 %v1098_v62, %v263_v63 }
  0xfb   :  { %v1101_v1 = vpop.f32.mrb[14].mxu0  ;;  %1247 = vmatprep.subr.bf16.mxu1 %v1246_v0 }
  0xfc   :  { %v273_v2 = vpop.f32.mrb[15].mxu0  ;;  %1249 = vmatpush3.bf16.msra.mxu1 %v1246_v0 }
  0xfd   :  { %v1250_v3 = vpack.c.bf16 %v1101_v1, %v273_v2 }
  0xff   :  { %1251 = vmatprep.subr.bf16.mxu1 %v1250_v3 }
 0x100   :  { %1253 = vmatpush3.bf16.msra.mxu1 %v1250_v3 }
 0x101   :  { %1286 = vmatprep.subr.bf16.mxu1 %v1495_v26 }
 0x103   :  { %1135 = vmatmul.mubr.f32.vlgmr.msra.gmra.mrb[0].mxu1 %v69_v4 }
 0x104   :  { %1137 = vmatprep.mubr.f32.mxu1 %v70_v5  ;;  %1294 = vmatpush3.bf16.msra.mxu1 %v1495_v26 }
 0x105   :  { %1287 = vmatprep.subr.bf16.mxu1 %v1500_v28 }
 0x107   :  { %1138 = vmatmul.mubr.f32.gmra.mrb[2].mxu1 %v71_v6 }
 0x108   :  { %1140 = vmatprep.mubr.f32.mxu1 %v72_v7  ;;  %1295 = vmatpush3.bf16.msra.mxu1 %v1500_v28 }
 0x109   :  { %1288 = vmatprep.subr.bf16.mxu1 %v1511_v31 }
 0x10b   :  { %1141 = vmatmul.mubr.f32.gmra.mrb[4].mxu1 %v73_v8 }
 0x10c   :  { %1143 = vmatprep.mubr.f32.mxu1 %v74_v9  ;;  %1296 = vmatpush3.bf16.msra.mxu1 %v1511_v31 }
 0x10d   :  { %1289 = vmatprep.subr.bf16.mxu1 %v1521_v34 }
 0x10f   :  { %1144 = vmatmul.mubr.f32.gmra.mrb[6].mxu1 %v75_v10 }
 0x110   :  { %1146 = vmatprep.mubr.f32.mxu1 %v76_v11  ;;  %1297 = vmatpush3.bf16.msra.mxu1 %v1521_v34 }
 0x111   :  { %1290 = vmatprep.subr.bf16.mxu1 %v1531_v37 }
 0x113   :  { %1147 = vmatmul.mubr.f32.gmra.mrb[8].mxu1 %v77_v12 }
 0x114   :  { %1149 = vmatprep.mubr.f32.mxu1 %v78_v13  ;;  %1298 = vmatpush3.bf16.msra.mxu1 %v1531_v37 }
 0x115   :  { %1291 = vmatprep.subr.bf16.mxu1 %v1541_v40 }
 0x117   :  { %1150 = vmatmul.mubr.f32.gmra.mrb[10].mxu1 %v79_v14 }
 0x118   :  { %1152 = vmatprep.mubr.f32.mxu1 %v80_v15  ;;  %1299 = vmatpush3.bf16.msra.mxu1 %v1541_v40 }
 0x119   :  { %1292 = vmatprep.subr.bf16.mxu1 %v1551_v43 }
 0x11b   :  { %1153 = vmatmul.mubr.f32.gmra.mrb[12].mxu1 %v81_v16 }
 0x11c   :  { %1155 = vmatprep.mubr.f32.mxu1 %v82_v17  ;;  %1300 = vmatpush3.bf16.msra.mxu1 %v1551_v43 }
 0x11d   :  { %1293 = vmatprep.subr.bf16.mxu1 %v1282_v21 }
 0x11f   :  { %1156 = vmatmul.mubr.f32.gmra.mrb[14].mxu1 %v83_v18 }
 0x120   :  { %1301 = vmatpush3.bf16.msra.mxu1 %v1282_v21 }
 0x1d6   :  { %v1136_v23 = vpop.f32.mrb[0].mxu1 }
 0x1d7   :  { %v502_v25 = vadd.f32 %v1136_v23, %v1624_v22  ;;  %v364_v26 = vpop.f32.mrb[1].mxu1 }
 0x1d8   :  { %v501_v27 = vadd.f32 %v1624_v22, %v364_v26  ;;  %v1357_v26 = vmov 0  }
 0x1d9   :  { %vm519_vm1 = vcmp.gt.f32.partialorder %v502_v25, 0.0  ;;  %v536_v28 = vmul.f32 %v1629_v24, %v502_v25  ;;  %1307 = vset.pattern.permute.xlu0 %v1357_v26  ;;  %1308 = vset.pattern.permute.xlu1 %v1357_v26 }
 0x1da   :  { %v535_v29 = vmul.f32 %v1629_v24, %v501_v27  ;;  %v1139_v30 = vpop.f32.mrb[2].mxu1  ;;  %vm518_vm2 = vcmp.gt.f32.partialorder %v501_v27, 0.0 }
 0x1db   :  { %v552_v31 = vsel %vm519_vm1, %v502_v25, %v536_v28  ;;  %v504_v32 = vadd.f32 %v1139_v30, %v1624_v22  ;;  %v374_v33 = vpop.f32.mrb[3].mxu1 }
 0x1dc   :  { %568 = vst [vmem:[#allocation7 + $0x8] sm:$0xff] %v552_v31  ;;  %v503_v34 = vadd.f32 %v1624_v22, %v374_v33  ;;  %v551_v35 = vsel %vm518_vm2, %v501_v27, %v535_v29 }
 0x1dd   :  { %v538_v36 = vmul.f32 %v1629_v24, %v504_v32  ;;  %567 = vst [vmem:[#allocation7] sm:$0xff] %v551_v35  ;;  %1190 = vmatprep.mubr.f32.mxu0 %v551_v35  ;;  %vm521_vm3 = vcmp.gt.f32.partialorder %v504_v32, 0.0 }
 0x1de   :  { %v537_v37 = vmul.f32 %v1629_v24, %v503_v34  ;;  %v1142_v38 = vpop.f32.mrb[4].mxu1  ;;  %1191 = vmatmul.mubr.f32.vlgmr.msra.gmra.mrb[16].mxu0 %v552_v31  ;;  %vm520_vm4 = vcmp.gt.f32.partialorder %v503_v34, 0.0 }
 0x1df   :  { %v506_v39 = vadd.f32 %v1142_v38, %v1624_v22  ;;  %v384_v40 = vpop.f32.mrb[5].mxu1  ;;  %v554_v41 = vsel %vm521_vm3, %v504_v32, %v538_v36 }
 0x1e0   :  { %v505_v42 = vadd.f32 %v1624_v22, %v384_v40  ;;  %v553_v43 = vsel %vm520_vm4, %v503_v34, %v537_v37  ;;  %570 = vst [vmem:[#allocation7 + $0x18] sm:$0xff] %v554_v41 }
 0x1e1   :  { %v540_v44 = vmul.f32 %v1629_v24, %v506_v39  ;;  %569 = vst [vmem:[#allocation7 + $0x10] sm:$0xff] %v553_v43  ;;  %1193 = vmatprep.mubr.f32.mxu0 %v553_v43  ;;  %vm523_vm5 = vcmp.gt.f32.partialorder %v506_v39, 0.0 }
 0x1e2   :  { %v539_v45 = vmul.f32 %v1629_v24, %v505_v42  ;;  %v1145_v46 = vpop.f32.mrb[6].mxu1  ;;  %1194 = vmatmul.mubr.f32.gmra.mrb[18].mxu0 %v554_v41  ;;  %vm522_vm6 = vcmp.gt.f32.partialorder %v505_v42, 0.0 }
 0x1e3   :  { %v508_v47 = vadd.f32 %v1145_v46, %v1624_v22  ;;  %v394_v48 = vpop.f32.mrb[7].mxu1  ;;  %v556_v49 = vsel %vm523_vm5, %v506_v39, %v540_v44 }
 0x1e4   :  { %v507_v50 = vadd.f32 %v1624_v22, %v394_v48  ;;  %v555_v51 = vsel %vm522_vm6, %v505_v42, %v539_v45  ;;  %572 = vst [vmem:[#allocation7 + $0x28] sm:$0xff] %v556_v49 }
 0x1e5   :  { %v542_v52 = vmul.f32 %v1629_v24, %v508_v47  ;;  %571 = vst [vmem:[#allocation7 + $0x20] sm:$0xff] %v555_v51  ;;  %1196 = vmatprep.mubr.f32.mxu0 %v555_v51  ;;  %vm525_vm7 = vcmp.gt.f32.partialorder %v508_v47, 0.0 }
 0x1e6   :  { %v541_v53 = vmul.f32 %v1629_v24, %v507_v50  ;;  %v1148_v54 = vpop.f32.mrb[8].mxu1  ;;  %1197 = vmatmul.mubr.f32.gmra.mrb[20].mxu0 %v556_v49  ;;  %vm524_vm8 = vcmp.gt.f32.partialorder %v507_v50, 0.0 }
 0x1e7   :  { %v510_v55 = vadd.f32 %v1148_v54, %v1624_v22  ;;  %v404_v56 = vpop.f32.mrb[9].mxu1  ;;  %v558_v57 = vsel %vm525_vm7, %v508_v47, %v542_v52 }
 0x1e8   :  { %v509_v58 = vadd.f32 %v1624_v22, %v404_v56  ;;  %v557_v59 = vsel %vm524_vm8, %v507_v50, %v541_v53  ;;  %574 = vst [vmem:[#allocation7 + $0x38] sm:$0xff] %v558_v57 }
 0x1e9   :  { %v544_v60 = vmul.f32 %v1629_v24, %v510_v55  ;;  %573 = vst [vmem:[#allocation7 + $0x30] sm:$0xff] %v557_v59  ;;  %1199 = vmatprep.mubr.f32.mxu0 %v557_v59  ;;  %vm527_vm9 = vcmp.gt.f32.partialorder %v510_v55, 0.0 }
 0x1ea   :  { %v543_v61 = vmul.f32 %v1629_v24, %v509_v58  ;;  %v1151_v62 = vpop.f32.mrb[10].mxu1  ;;  %1200 = vmatmul.mubr.f32.gmra.mrb[22].mxu0 %v558_v57  ;;  %vm526_vm10 = vcmp.gt.f32.partialorder %v509_v58, 0.0 }
 0x1eb   :  { %v512_v63 = vadd.f32 %v1151_v62, %v1624_v22  ;;  %v414_v0 = vpop.f32.mrb[11].mxu1  ;;  %v560_v1 = vsel %vm527_vm9, %v510_v55, %v544_v60 }
 0x1ec   :  { %v511_v2 = vadd.f32 %v1624_v22, %v414_v0  ;;  %v559_v3 = vsel %vm526_vm10, %v509_v58, %v543_v61  ;;  %576 = vst [vmem:[#allocation7 + $0x48] sm:$0xff] %v560_v1 }
 0x1ed   :  { %v546_v4 = vmul.f32 %v1629_v24, %v512_v63  ;;  %575 = vst [vmem:[#allocation7 + $0x40] sm:$0xff] %v559_v3  ;;  %1202 = vmatprep.mubr.f32.mxu0 %v559_v3  ;;  %vm529_vm11 = vcmp.gt.f32.partialorder %v512_v63, 0.0 }
 0x1ee   :  { %v545_v5 = vmul.f32 %v1629_v24, %v511_v2  ;;  %v1154_v6 = vpop.f32.mrb[12].mxu1  ;;  %1203 = vmatmul.mubr.f32.gmra.mrb[24].mxu0 %v560_v1  ;;  %vm528_vm12 = vcmp.gt.f32.partialorder %v511_v2, 0.0 }
 0x1ef   :  { %v514_v7 = vadd.f32 %v1154_v6, %v1624_v22  ;;  %v424_v8 = vpop.f32.mrb[13].mxu1  ;;  %v562_v9 = vsel %vm529_vm11, %v512_v63, %v546_v4 }
 0x1f0   :  { %v513_v10 = vadd.f32 %v1624_v22, %v424_v8  ;;  %v561_v11 = vsel %vm528_vm12, %v511_v2, %v545_v5  ;;  %578 = vst [vmem:[#allocation7 + $0x58] sm:$0xff] %v562_v9 }
 0x1f1   :  { %v548_v12 = vmul.f32 %v1629_v24, %v514_v7  ;;  %577 = vst [vmem:[#allocation7 + $0x50] sm:$0xff] %v561_v11  ;;  %1205 = vmatprep.mubr.f32.mxu0 %v561_v11  ;;  %vm531_vm13 = vcmp.gt.f32.partialorder %v514_v7, 0.0 }
 0x1f2   :  { %v547_v13 = vmul.f32 %v1629_v24, %v513_v10  ;;  %v1157_v14 = vpop.f32.mrb[14].mxu1  ;;  %1206 = vmatmul.mubr.f32.gmra.mrb[26].mxu0 %v562_v9  ;;  %vm530_vm14 = vcmp.gt.f32.partialorder %v513_v10, 0.0 }
 0x1f3   :  { %v516_v15 = vadd.f32 %v1157_v14, %v1624_v22  ;;  %v434_v16 = vpop.f32.mrb[15].mxu1  ;;  %v564_v17 = vsel %vm531_vm13, %v514_v7, %v548_v12 }
 0x1f4   :  { %v515_v18 = vadd.f32 %v1624_v22, %v434_v16  ;;  %v563_v19 = vsel %vm530_vm14, %v513_v10, %v547_v13  ;;  %580 = vst [vmem:[#allocation7 + $0x68] sm:$0xff] %v564_v17  ;;  %v745_v22 = vstv %s1732_s6  ;;  %s954_s6 = sshll.u32 %s1358_s5, 4  ;;  %s955_s6 = int_to_ptr.vmem [resolvable:$true] %s954_s6 }
 0x1f5   :  { %vm533_vm15 = vcmp.gt.f32.partialorder %v516_v15, 0.0  ;;  %v550_v20 = vmul.f32 %v1629_v24, %v516_v15  ;;  %579 = vst [vmem:[#allocation7 + $0x60] sm:$0xff] %v563_v19  ;;  %1208 = vmatprep.mubr.f32.mxu0 %v563_v19  ;;  %s1309_s17 = scalar_lea.vmem %s955_s6, 2048  ;;  %p1314_p1 = scmp.lt.s32.totalorder %s955_s6, %s955_s6 }
 0x1f6   :  { %v549_v21 = vmul.f32 %v1629_v24, %v515_v18  ;;  %1209 = vmatmul.mubr.f32.gmra.mrb[28].mxu0 %v564_v17  ;;  %vm532_vm0 = vcmp.gt.f32.partialorder %v515_v18, 0.0  ;;  %p1310_p0 = scmp.ne.s32.totalorder %s955_s6, %s1309_s17  ;;  %p1315_p2 = scmp.lt.s32.totalorder %s1309_s17, %s1309_s17 }
 0x1f7   :  { %v566_v23 = vsel %vm533_vm15, %v516_v15, %v550_v20 }
 0x1f8   :  { %582 = vst [vmem:[#allocation7 + $0x78] sm:$0xff] %v566_v23  ;;  %v565_v25 = vsel %vm532_vm0, %v515_v18, %v549_v21  ;;  %p1316_p3 = por %p1315_p2, %p1314_p1 }
 0x1f9   :  { %581 = vst [vmem:[#allocation7 + $0x70] sm:$0xff] %v565_v25  ;;  %1211 = vmatprep.mubr.f32.mxu1 %v565_v25 }
 0x1fa   :  { %1212 = vmatmul.mubr.f32.vlgmr.msra.gmra.mrb[16].mxu1 %v566_v23  ;;  %p1317_p4 = pnand %p1316_p3, %p1310_p0 }
 0x2b1   :  { %v1192_v27 = vpop.f32.mrb[16].mxu0 }
 0x2b2   :  { %v747_v28 = vadd.f32 %v1192_v27, %v745_v22  ;;  %v665_v29 = vpop.f32.mrb[17].mxu0 }
 0x2b3   :  { %v746_v30 = vadd.f32 %v745_v22, %v665_v29 }
 0x2b4   :  { %782 = vperm.xlu0 %1307, %v747_v28  }
 0x2b5   :  { %v1195_v24 = vpop.f32.mrb[18].mxu0 }
 0x2b6   :  { %v749_v31 = vadd.f32 %v1195_v24, %v745_v22  ;;  %v675_v32 = vpop.f32.mrb[19].mxu0 }
 0x2b7   :  { %v748_v34 = vadd.f32 %v745_v22, %v675_v32 }
 0x2b8   :  { %779 = vperm.xlu0 %1307, %v746_v30   ;;  %788 = vperm.xlu1 %1308, %v749_v31  }
 0x2b9   :  { %v1198_v33 = vpop.f32.mrb[20].mxu0 }
 0x2ba   :  { %v685_v35 = vpop.f32.mrb[21].mxu0  ;;  %v751_v38 = vadd.f32 %v1198_v33, %v745_v22 }
 0x2bb   :  { %v750_v36 = vadd.f32 %v745_v22, %v685_v35 }
 0x2bc   :  { %785 = vperm.xlu1 %1308, %v748_v34  }
 0x2bd   :  { %791 = vperm.xlu0 %1307, %v750_v36   ;;  %v1201_v37 = vpop.f32.mrb[22].mxu0 }
 0x2be   :  { %v695_v39 = vpop.f32.mrb[23].mxu0  ;;  %v753_v42 = vadd.f32 %v1201_v37, %v745_v22 }
 0x2bf   :  { %v752_v40 = vadd.f32 %v745_v22, %v695_v39 }
 0x2c0   :  { %794 = vperm.xlu1 %1308, %v751_v38  }
 0x2c1   :  { %797 = vperm.xlu0 %1307, %v752_v40   ;;  %v1204_v41 = vpop.f32.mrb[24].mxu0 }
 0x2c2   :  { %v705_v43 = vpop.f32.mrb[25].mxu0  ;;  %v755_v46 = vadd.f32 %v1204_v41, %v745_v22 }
 0x2c3   :  { %v754_v44 = vadd.f32 %v745_v22, %v705_v43 }
 0x2c4   :  { %800 = vperm.xlu1 %1308, %v753_v42  }
 0x2c5   :  { %803 = vperm.xlu0 %1307, %v754_v44   ;;  %v1207_v45 = vpop.f32.mrb[26].mxu0 }
 0x2c6   :  { %v715_v47 = vpop.f32.mrb[27].mxu0  ;;  %v757_v50 = vadd.f32 %v1207_v45, %v745_v22 }
 0x2c7   :  { %v756_v48 = vadd.f32 %v745_v22, %v715_v47 }
 0x2c8   :  { %806 = vperm.xlu1 %1308, %v755_v46  }
 0x2c9   :  { %809 = vperm.xlu0 %1307, %v756_v48   ;;  %v1210_v49 = vpop.f32.mrb[28].mxu0 }
 0x2ca   :  { %v725_v51 = vpop.f32.mrb[29].mxu0  ;;  %v759_v54 = vadd.f32 %v1210_v49, %v745_v22 }
 0x2cb   :  { %v758_v52 = vadd.f32 %v745_v22, %v725_v51 }
 0x2cc   :  { %812 = vperm.xlu1 %1308, %v757_v50  }
 0x2cd   :  { %815 = vperm.xlu0 %1307, %v758_v52   ;;  %v1213_v53 = vpop.f32.mrb[16].mxu1 }
 0x2ce   :  { %v735_v55 = vpop.f32.mrb[17].mxu1  ;;  %v761_v57 = vadd.f32 %v1213_v53, %v745_v22 }
 0x2cf   :  { %v760_v56 = vadd.f32 %v745_v22, %v735_v55 }
 0x2d0   :  { %818 = vperm.xlu1 %1308, %v759_v54  }
 0x2d1   :  { %821 = vperm.xlu0 %1307, %v760_v56  }
 0x2d4   :  { %824 = vperm.xlu1 %1308, %v761_v57  }
 0x2d5   :  { %1320 = shalt.err (!%p1317_p4)
}
 0x2d6   :  { %s1321_s19 = scalar_lea.hbm %s1734_s8, 2048 }
 0x2d7   :  { %p1322_p5 = scmp.ne.s32.totalorder %s1734_s8, %s1321_s19  ;;  %p1325_p6 = scmp.lt.u32.totalorder %s1321_s19, %s1734_s8 }
 0x2d9   :  { %p1327_p7 = pnand %p1325_p6, %p1322_p5 }
 0x2db   :  { %1330 = shalt.err (!%p1327_p7)
}
 0x2dc   :  { %s1359_s24 = smov 128   ;;  %s1360_s25 = smov 8   ;;  %v826_v58 = vlaneseq  ;;  %vm837_vm1 = vcmask 130112   ;;  %vm844_vm2 = vcmask 195712   ;;  %vm851_vm3 = vcmask 261312  }
 0x2dd   :  { %960 = dma.vmem_to_hbm [thread:$0]  %s955_s6, 2048, %s1734_s8, [#allocation8], %s1359_s24, %s1359_s24, %s1360_s25   ;;  %vm858_vm4 = vcmask 326912   ;;  %vm865_vm5 = vcmask 392512   ;;  %vm872_vm6 = vcmask 458112   ;;  %vm879_vm7 = vcmask 523712  }
 0x2de   :  { %v1678_v59 = vand.u32 127, %v826_v58  ;;  %v1680_v60 = vshrl.u32 %v826_v58, 7  ;;  %vm886_vm8 = vcmask 589312   ;;  %vm893_vm9 = vcmask 654912   ;;  %s1361_s8 = smov [#allocation5]  }
 0x2df   :  { %vm900_vm10 = vcmask 720512   ;;  %vm907_vm11 = vcmask 786112   ;;  %vm914_vm12 = vcmask 851712   ;;  %vm921_vm13 = vcmask 917312   ;;  %s945_s28 = sshll.u32 %s1361_s8, 4  ;;  %s946_s28 = int_to_ptr.vmem [resolvable:$true] %s945_s28 }
 0x2e0   :  { %v832_v61 = vadd.s32 4294967288, %v1678_v59  ;;  %v839_v63 = vadd.s32 4294967280, %v1678_v59  ;;  %v830_v0 = vsub.s32 %v1678_v59, %v1680_v60  ;;  %v846_v1 = vadd.s32 4294967272, %v1678_v59  ;;  %s1331_s0 = scalar_lea.vmem %s946_s28, 16  ;;  %s1335_s29 = scalar_lea.vmem %s946_s28, 32 }
 0x2e1   :  { %v853_v2 = vadd.s32 4294967264, %v1678_v59  ;;  %v860_v6 = vadd.s32 4294967256, %v1678_v59  ;;  %v867_v8 = vadd.s32 4294967248, %v1678_v59  ;;  %v874_v18 = vadd.s32 4294967240, %v1678_v59  ;;  %p1332_p8 = scmp.ne.s32.totalorder %s946_s28, %s1331_s0  ;;  %p1336_p9 = scmp.lt.s32.totalorder %s946_s28, %s946_s28 }
 0x2e2   :  { %v835_v3 = vsub.s32 %v832_v61, %v1680_v60  ;;  %v842_v7 = vsub.s32 %v839_v63, %v1680_v60  ;;  %v849_v10 = vsub.s32 %v846_v1, %v1680_v60  ;;  %v881_v23 = vadd.s32 4294967232, %v1678_v59  ;;  %p1337_p10 = scmp.lt.s32.totalorder %s1335_s29, %s1331_s0 }
 0x2e3   :  { %v856_v11 = vsub.s32 %v853_v2, %v1680_v60  ;;  %v863_v14 = vsub.s32 %v860_v6, %v1680_v60  ;;  %v870_v17 = vsub.s32 %v867_v8, %v1680_v60  ;;  %v877_v24 = vsub.s32 %v874_v18, %v1680_v60 }
 0x2e4   :  { %v888_v30 = vadd.s32 4294967224, %v1678_v59  ;;  %v884_v32 = vsub.s32 %v881_v23, %v1680_v60  ;;  %v895_v33 = vadd.s32 4294967216, %v1678_v59  ;;  %v902_v39 = vadd.s32 4294967208, %v1678_v59  ;;  %p1338_p11 = por %p1337_p10, %p1336_p9 }
 0x2e5   :  { %v909_v43 = vadd.s32 4294967200, %v1678_v59  ;;  %v916_v49 = vadd.s32 4294967192, %v1678_v59  ;;  %v923_v53 = vadd.s32 4294967184, %v1678_v59  ;;  %v930_v61 = vadd.s32 4294967176, %v1678_v59 }
 0x2e6   :  { %v891_v38 = vsub.s32 %v888_v30, %v1680_v60  ;;  %v898_v42 = vsub.s32 %v895_v33, %v1680_v60  ;;  %v905_v48 = vsub.s32 %v902_v39, %v1680_v60  ;;  %vm928_vm14 = vcmask 982912   ;;  %p1339_p12 = pnand %p1338_p11, %p1332_p8 }
 0x2e7   :  { %v912_v52 = vsub.s32 %v909_v43, %v1680_v60  ;;  %v919_v58 = vsub.s32 %v916_v49, %v1680_v60  ;;  %vm935_vm15 = vcmask 1048512  }
 0x333   :  { %v783_v62 = vpop.permute.xlu0 %782 }
 0x334   :  { %v836_v12 = vrot.slane %v783_v62, %v835_v3 }
 0x337   :  { %v780_v4 = vpop.permute.xlu0 %779  ;;  %v789_v5 = vpop.permute.xlu1 %788 }
 0x338   :  { %v831_v9 = vrot.slane %v780_v4, %v830_v0  ;;  %v850_v20 = vrot.slane %v789_v5, %v849_v10  ;;  %v926_v0 = vsub.s32 %v923_v53, %v1680_v60  ;;  %v933_v5 = vsub.s32 %v930_v61, %v1680_v60 }
 0x33a   :  { %v838_v19 = vsel %vm837_vm1, %v836_v12, %v831_v9 }
 0x33b   :  { %v786_v13 = vpop.permute.xlu1 %785 }
 0x33c   :  { %v843_v15 = vrot.slane %v786_v13, %v842_v7  ;;  %v792_v16 = vpop.permute.xlu0 %791 }
 0x33d   :  { %v857_v21 = vrot.slane %v792_v16, %v856_v11 }
 0x33e   :  { %v845_v25 = vsel %vm844_vm2, %v843_v15, %v838_v19 }
 0x33f   :  { %v852_v26 = vsel %vm851_vm3, %v850_v20, %v845_v25  ;;  %v795_v22 = vpop.permute.xlu1 %794 }
 0x340   :  { %v859_v27 = vsel %vm858_vm4, %v857_v21, %v852_v26  ;;  %v864_v28 = vrot.slane %v795_v22, %v863_v14  ;;  %v798_v29 = vpop.permute.xlu0 %797 }
 0x341   :  { %v871_v31 = vrot.slane %v798_v29, %v870_v17 }
 0x342   :  { %v866_v34 = vsel %vm865_vm5, %v864_v28, %v859_v27 }
 0x343   :  { %v801_v35 = vpop.permute.xlu1 %800  ;;  %v873_v40 = vsel %vm872_vm6, %v871_v31, %v866_v34 }
 0x344   :  { %v878_v36 = vrot.slane %v801_v35, %v877_v24  ;;  %v804_v37 = vpop.permute.xlu0 %803 }
 0x345   :  { %v885_v41 = vrot.slane %v804_v37, %v884_v32 }
 0x346   :  { %v880_v44 = vsel %vm879_vm7, %v878_v36, %v873_v40 }
 0x347   :  { %v807_v45 = vpop.permute.xlu1 %806  ;;  %v887_v50 = vsel %vm886_vm8, %v885_v41, %v880_v44 }
 0x348   :  { %v892_v46 = vrot.slane %v807_v45, %v891_v38  ;;  %v810_v47 = vpop.permute.xlu0 %809 }
 0x349   :  { %v899_v51 = vrot.slane %v810_v47, %v898_v42 }
 0x34a   :  { %v894_v54 = vsel %vm893_vm9, %v892_v46, %v887_v50 }
 0x34b   :  { %v813_v55 = vpop.permute.xlu1 %812  ;;  %v901_v62 = vsel %vm900_vm10, %v899_v51, %v894_v54 }
 0x34c   :  { %v906_v56 = vrot.slane %v813_v55, %v905_v48  ;;  %v816_v57 = vpop.permute.xlu0 %815 }
 0x34d   :  { %v913_v63 = vrot.slane %v816_v57, %v912_v52 }
 0x34e   :  { %v908_v1 = vsel %vm907_vm11, %v906_v56, %v901_v62 }
 0x34f   :  { %v819_v2 = vpop.permute.xlu1 %818  ;;  %v915_v6 = vsel %vm914_vm12, %v913_v63, %v908_v1 }
 0x350   :  { %v920_v3 = vrot.slane %v819_v2, %v919_v58  ;;  %v822_v4 = vpop.permute.xlu0 %821 }
 0x351   :  { %v927_v7 = vrot.slane %v822_v4, %v926_v0 }
 0x352   :  { %v922_v8 = vsel %vm921_vm13, %v920_v3, %v915_v6 }
 0x353   :  { %v825_v9 = vpop.permute.xlu1 %824  ;;  %v929_v10 = vsel %vm928_vm14, %v927_v7, %v922_v8 }
 0x354   :  { %v934_v59 = vrot.slane %v825_v9, %v933_v5 }
 0x356   :  { %v936_v11 = vsel %vm935_vm15, %v934_v59, %v929_v10 }
 0x357   :  { %938 = vst [vmem:[#allocation5] sm:$0x1] %v936_v11 }
 0x358   :  { %1342 = shalt.err (!%p1339_p12)
}
 0x359   :  { %s1343_s10 = scalar_lea.hbm %s1733_s7, 16 }
 0x35a   :  { %p1344_p13 = scmp.ne.s32.totalorder %s1733_s7, %s1343_s10  ;;  %p1347_p0 = scmp.lt.u32.totalorder %s1343_s10, %s1733_s7 }
 0x35c   :  { %p1349_p1 = pnand %p1347_p0, %p1344_p13 }
 0x35e   :  { %1352 = shalt.err (!%p1349_p1)
}
 0x35f   :  { %948 = dma.vmem_to_hbm [thread:$0]  %s946_s28, 16, %s1733_s7, [#allocation6]  }
 0x360   :  { %1353 = dma.done.wait [#allocation6], 16  }
 0x361   :  { %1354 = vsyncadd [#allocation6], 4294967280 }
 0x362   :  { %1355 = dma.done.wait [#allocation8], 2048  }
 0x363   :  { %1356 = vsyncadd [#allocation8], 4294965248 }
 0x364   :  { %967 = vsyncpa [#allocation6], 1 }
 0x365   :  { %968 = vsyncpa [#allocation8], 1 }

</bundles_post_ra>
